<compile_context>
chip_gen: v7x
topology: tpu7x:2x2x1
jax: 0.10.0
libtpu: 0.0.40
codegen_flags: <defaults>
</compile_context>

<pallas_src>
import jax
import jax.numpy as jnp
from jax.experimental import pallas as pl
from jax.experimental.pallas import tpu as pltpu

LANE = 128
MXU_MIN_CIN = 128          # below this, use the exact f32 VPU FMA path


def _conv1x1_vpu_kernel(x_ref, w_ref, b_ref, o_ref):
    # x_ref: (1, Cin, T) f32 | w_ref: (Cout, Cin) f32 | b_ref: (Cout, 1) f32
    # o_ref: (1, Cout, T)    | T is a multiple of 128 -> lane-dense stores.
    x = x_ref[0]                                    # (Cin, T)
    w = w_ref[...]                                  # (Cout, Cin)
    cin, t = x.shape
    cout = w.shape[0]
    acc = jnp.broadcast_to(b_ref[...], (cout, t))   # start from the bias (f32)
    for c in range(cin):                            # static unroll: Cin VPU FMAs / lane
        acc = acc + w[:, c:c + 1] * x[c:c + 1, :]   # (Cout,1)*(1,T) -> (Cout,T)
    o_ref[0] = acc.astype(o_ref.dtype)


def _conv1x1_mxu_kernel(x_ref, w_ref, b_ref, o_ref):
    # Large-Cin path: bf16 MXU operands (cast in-kernel, no extra HBM pass),
    # f32 accumulation, bias epilogue in f32.
    x = x_ref[0].astype(jnp.bfloat16)               # (Cin, T)
    w = w_ref[...].astype(jnp.bfloat16)             # (Cout, Cin)
    acc = jnp.dot(w, x, preferred_element_type=jnp.float32)   # (Cout, T) f32
    o_ref[0] = (acc + b_ref[...]).astype(o_ref.dtype)


def _cdiv(a, b):
    return -(-a // b)


def _vmem_budget_bytes():
    """Double-buffered working-set budget: ~1/4 of physical VMEM (v7x-safe)."""
    try:
        cap = pltpu.get_tpu_info().vmem_capacity_bytes
    except Exception:
        cap = 64 * 1024 * 1024          # assume the smallest (v7x) if query fails
    return cap // 4


def _spatial_tile(hw, cin, cout, out_bytes, n_batch, budget):
    """Multiple-of-128 spatial tile fitting the VMEM budget, with >=2 grid steps."""
    hw_up = _cdiv(hw, LANE) * LANE
    per_lane = 2 * (cin * 4 + cout * out_bytes)     # double-buffered x (f32) + y blocks
    t = max(LANE, min(hw_up, (budget // per_lane) // LANE * LANE))
    # v7x has 2 TensorCores: make sure the 'parallel' grid has >= 2 steps.
    while n_batch * _cdiv(hw, t) < 2 and t > LANE:
        t = max(LANE, (t // 2) // LANE * LANE)
    return t


def outconv_forward(params, x, out_dtype=jnp.float32):
    """Forward of outconv: y = Conv2d(in_ch, out_ch, kernel_size=1)(x), NCHW."""
    w, b = params['w'], params['b']                 # w: (Cout, Cin), b: (Cout,)
    n, cin, h, wdt = x.shape
    cout = w.shape[0]
    hw = h * wdt

    budget = _vmem_budget_bytes()
    out_bytes = jnp.dtype(out_dtype).itemsize
    t = _spatial_tile(hw, cin, cout, out_bytes, n, budget)
    grid = (n, _cdiv(hw, t))                        # cdiv grid: ragged tail is masked

    kernel = _conv1x1_mxu_kernel if cin >= MXU_MIN_CIN else _conv1x1_vpu_kernel

    xf = x.reshape(n, cin, hw)                      # free reshape; no pad, no cast
    out = pl.pallas_call(
        kernel,
        out_shape=jax.ShapeDtypeStruct((n, cout, hw), out_dtype),
        grid=grid,
        in_specs=[
            pl.BlockSpec((1, cin, t), lambda i, s: (i, 0, s)),
            pl.BlockSpec((cout, cin), lambda i, s: (0, 0)),
            pl.BlockSpec((cout, 1), lambda i, s: (0, 0)),
        ],
        out_specs=pl.BlockSpec((1, cout, t), lambda i, s: (i, 0, s)),
        compiler_params=pltpu.CompilerParams(
            dimension_semantics=("parallel", "parallel"),
            vmem_limit_bytes=2 * budget,            # 32 MiB on v7x, 64 MiB on v5e/v6e
        ),
    )(xf, w.astype(jnp.float32), b.reshape(cout, 1).astype(jnp.float32))

    return out.reshape(n, cout, h, wdt)


def init_outconv_params(key, in_ch, out_ch):
    kw, kb = jax.random.split(key)
    bound = 1.0 / (in_ch ** 0.5)                    # PyTorch Conv2d default init range
    w = jax.random.uniform(kw, (out_ch, in_ch), jnp.float32, -bound, bound)
    b = jax.random.uniform(kb, (out_ch,), jnp.float32, -bound, bound)
    return dict(w=w, b=b)


if __name__ == "__main__":
    key = jax.random.PRNGKey(0)

    def ref_conv1x1(p, x):
        return jnp.einsum('oc,nchw->nohw', p['w'], x) + p['b'][None, :, None, None]

    # 1) The actual outconv case: small Cin/Cout, exact f32 VPU path.
    pkey, xkey, key = jax.random.split(key, 3)
    params = init_outconv_params(pkey, 4, 1)
    x = jax.random.normal(xkey, (2, 4, 16, 16), jnp.float32)
    out = jax.jit(outconv_forward)(params, x)
    jax.block_until_ready(out)
    assert out.shape == (2, 1, 16, 16), out.shape
    ref = ref_conv1x1(params, x)
    assert jnp.allclose(out, ref, atol=1e-4, rtol=1e-4), \
        float(jnp.max(jnp.abs(out - ref)))

    # 2) Ragged spatial extent (H*W % 128 != 0): masked tail block, and the
    #    N == 1 case that forces >= 2 spatial tiles for v7x megacore.
    pkey, xkey, key = jax.random.split(key, 3)
    params2 = init_outconv_params(pkey, 6, 3)
    x2 = jax.random.normal(xkey, (1, 6, 13, 13), jnp.float32)
    out2 = jax.jit(outconv_forward)(params2, x2)
    jax.block_until_ready(out2)
    assert out2.shape == (1, 3, 13, 13), out2.shape
    ref2 = ref_conv1x1(params2, x2)
    assert jnp.allclose(out2, ref2, atol=1e-4, rtol=1e-4), \
        float(jnp.max(jnp.abs(out2 - ref2)))

    # 3) Large-Cin reuse: bf16 MXU path with f32 accumulation.
    pkey, xkey, key = jax.random.split(key, 3)
    params3 = init_outconv_params(pkey, 128, 2)
    x3 = jax.random.normal(xkey, (1, 128, 8, 8), jnp.float32)
    out3 = jax.jit(outconv_forward)(params3, x3)
    jax.block_until_ready(out3)
    assert out3.shape == (1, 2, 8, 8), out3.shape
    ref3 = ref_conv1x1(params3, x3)
    assert jnp.allclose(out3, ref3, atol=5e-2, rtol=5e-2), \
        float(jnp.max(jnp.abs(out3 - ref3)))

    print("KERNEL_OK")
</pallas_src>

<mosaic_0001>
module attributes {stable_mosaic.version = 11 : i64} {
  func.func @_conv1x1_vpu_kernel(%arg0: i32, %arg1: i32, %arg2: memref<1x4x256xf32, #tpu.memory_space<vmem>>, %arg3: memref<1x4xf32, #tpu.memory_space<vmem>>, %arg4: memref<1x1xf32, #tpu.memory_space<vmem>>, %arg5: memref<1x1x256xf32, #tpu.memory_space<vmem>>) attributes {dimension_semantics = [#tpu.dimension_semantics<parallel>, #tpu.dimension_semantics<parallel>], iteration_bounds = array<i64: 2, 1>, scalar_prefetch = 0 : i64, scratch_operands = 0 : i64, tpu.core_type = #tpu.core_type<tc>, window_params = [{transform_indices = @transform_0, window_bounds = array<i64: 1, 4, 256>}, {pipeline_mode = #tpu.pipeline_mode<synchronous>, transform_indices = @transform_1, window_bounds = array<i64: 1, 4>}, {pipeline_mode = #tpu.pipeline_mode<synchronous>, transform_indices = @transform_2, window_bounds = array<i64: 1, 1>}, {transform_indices = @transform_3, window_bounds = array<i64: 1, 1, 256>}]} {
    %c0 = arith.constant 0 : index
    %c0_0 = arith.constant 0 : index
    %c0_1 = arith.constant 0 : index
    %0 = vector.load %arg2[%c0, %c0_0, %c0_1] : memref<1x4x256xf32, #tpu.memory_space<vmem>>, vector<1x4x256xf32>
    %1 = vector.shape_cast %0 : vector<1x4x256xf32> to vector<4x256xf32>
    %c0_2 = arith.constant 0 : index
    %c0_3 = arith.constant 0 : index
    %2 = vector.load %arg3[%c0_2, %c0_3] : memref<1x4xf32, #tpu.memory_space<vmem>>, vector<1x4xf32>
    %c0_4 = arith.constant 0 : index
    %c0_5 = arith.constant 0 : index
    %3 = vector.load %arg4[%c0_4, %c0_5] : memref<1x1xf32, #tpu.memory_space<vmem>>, vector<1x1xf32>
    %4 = vector.shape_cast %3 : vector<1x1xf32> to vector<1x1xf32>
    %5 = vector.broadcast %4 : vector<1x1xf32> to vector<1x256xf32>
    %6 = vector.extract_strided_slice %2 {offsets = [0, 0], sizes = [1, 1], strides = [1, 1]} : vector<1x4xf32> to vector<1x1xf32>
    %7 = vector.extract_strided_slice %1 {offsets = [0, 0], sizes = [1, 256], strides = [1, 1]} : vector<4x256xf32> to vector<1x256xf32>
    %8 = vector.broadcast %6 : vector<1x1xf32> to vector<1x256xf32>
    %9 = arith.mulf %8, %7 : vector<1x256xf32>
    %10 = arith.addf %5, %9 : vector<1x256xf32>
    %11 = vector.extract_strided_slice %2 {offsets = [0, 1], sizes = [1, 1], strides = [1, 1]} : vector<1x4xf32> to vector<1x1xf32>
    %12 = vector.extract_strided_slice %1 {offsets = [1, 0], sizes = [1, 256], strides = [1, 1]} : vector<4x256xf32> to vector<1x256xf32>
    %13 = vector.broadcast %11 : vector<1x1xf32> to vector<1x256xf32>
    %14 = arith.mulf %13, %12 : vector<1x256xf32>
    %15 = arith.addf %10, %14 : vector<1x256xf32>
    %16 = vector.extract_strided_slice %2 {offsets = [0, 2], sizes = [1, 1], strides = [1, 1]} : vector<1x4xf32> to vector<1x1xf32>
    %17 = vector.extract_strided_slice %1 {offsets = [2, 0], sizes = [1, 256], strides = [1, 1]} : vector<4x256xf32> to vector<1x256xf32>
    %18 = vector.broadcast %16 : vector<1x1xf32> to vector<1x256xf32>
    %19 = arith.mulf %18, %17 : vector<1x256xf32>
    %20 = arith.addf %15, %19 : vector<1x256xf32>
    %21 = vector.extract_strided_slice %2 {offsets = [0, 3], sizes = [1, 1], strides = [1, 1]} : vector<1x4xf32> to vector<1x1xf32>
    %22 = vector.extract_strided_slice %1 {offsets = [3, 0], sizes = [1, 256], strides = [1, 1]} : vector<4x256xf32> to vector<1x256xf32>
    %23 = vector.broadcast %21 : vector<1x1xf32> to vector<1x256xf32>
    %24 = arith.mulf %23, %22 : vector<1x256xf32>
    %25 = arith.addf %20, %24 : vector<1x256xf32>
    %c0_6 = arith.constant 0 : index
    %c0_7 = arith.constant 0 : index
    %c0_8 = arith.constant 0 : index
    %26 = vector.load %arg5[%c0_6, %c0_7, %c0_8] : memref<1x1x256xf32, #tpu.memory_space<vmem>>, vector<1x1x256xf32>
    %27 = vector.shape_cast %26 : vector<1x1x256xf32> to vector<1x256xf32>
    %28 = vector.shape_cast %25 : vector<1x256xf32> to vector<1x1x256xf32>
    tpu.vector_store %arg5[%c0_6, %c0_7, %c0_8], %28 {strides = array<i32>} : memref<1x1x256xf32, #tpu.memory_space<vmem>>, vector<1x1x256xf32>,
    return
  }
  func.func @transform_0(%arg0: i32, %arg1: i32) -> (i32, i32, i32) {
    %c0_i32 = arith.constant 0 : i32
    %c0_i32_0 = arith.constant 0 : i32
    return %arg0, %c0_i32, %arg1 : i32, i32, i32
  }
  func.func @transform_1(%arg0: i32, %arg1: i32) -> (i32, i32) {
    %c0_i32 = arith.constant 0 : i32
    %c0_i32_0 = arith.constant 0 : i32
    %c0_i32_1 = arith.constant 0 : i32
    return %c0_i32, %c0_i32_0 : i32, i32
  }
  func.func @transform_2(%arg0: i32, %arg1: i32) -> (i32, i32) {
    %c0_i32 = arith.constant 0 : i32
    %c0_i32_0 = arith.constant 0 : i32
    %c0_i32_1 = arith.constant 0 : i32
    return %c0_i32, %c0_i32_0 : i32, i32
  }
  func.func @transform_3(%arg0: i32, %arg1: i32) -> (i32, i32, i32) {
    %c0_i32 = arith.constant 0 : i32
    %c0_i32_0 = arith.constant 0 : i32
    return %arg0, %c0_i32, %arg1 : i32, i32, i32
  }
}

</mosaic_0001>

<bundles_post_ra>
// kernel: outconv_forward.1
= control target key start
LH: loop header
LB: loop body
LE: loop exit
PB: predicated region body
PF: predicated region fallthrough
CT: control target
= control target key end

     0   :  { %s478_s14 = smov 0   ;;  %s480_s15 = smov 0   ;;  %s518_s0 = inlined_call_operand.vmem [shape: f32[2,4,256], index: 0, kind: input, shape index: {}]   ;;  %s519_s1 = inlined_call_operand.vmem [shape: f32[1,4], index: 1, kind: input, shape index: {}]   ;;  %s520_s2 = inlined_call_operand.<no memory space> [shape: f32[1,1], index: 2, kind: input, shape index: {}]   ;;  %s521_s3 = inlined_call_operand.vmem [shape: f32[2,1,256], index: 3, kind: output, shape index: {}]  }
   0x1   :  { %v8_v0 = vstv %s520_s2  ;;  %s482_s16 = smov 0  }
   0x2   :  { %9 = vst [vmem:[#allocation2] sm:$0x1] %v8_v0 }
   0x3 LB: > { %s27_s2 = sadd.s32 1, %s444_s15  ;;  %p381_p0 = scmp.ge.s32.totalorder %s448_s16, 1  ;;  %s448_s16 = sphi %s482_s16, %s15_s16   ;;  %s444_s15 = sphi %s480_s15, %s523_s15   ;;  %s440_s14 = sphi %s478_s14, %s522_s14  }
   0x4   : > { %p29_p1 = scmp.ge.s32.totalorder %s27_s2, 2  ;;  %p160_p2 = scmp.lt.s32.totalorder %s448_s16, 3 }
   0x6   : > { %s525_s2 = smov (%p29_p1, %s27_s2), 0  ;;  %p161_p3 = pnand %p381_p0, %p160_p2 }
   0x7   : > { %v211_v2 = vld [vmem:[%s519_s1] sm:$0x1] (!%p161_p3)  ;;  %v450_v3 = vmov (!%p161_p3), 0   ;;  %v451_v4 = vmov (!%p161_p3), 2   ;;  %v452_v5 = vmov (!%p161_p3), 1   ;;  %v453_v6 = vmov (!%p161_p3), 3  }
   0x8   : > { %164 = sbr.rel (%p161_p3) target bundleno = 161 (0xa1), region = 32  ;;  %422 = vset.pattern.permute.xlu1 (!%p161_p3), %v450_v3  ;;  %420 = vset.pattern.permute.xlu0 (!%p161_p3), %v450_v3  ;;  %p192_p4 = scmp.lt.s32.totalorder (!%p161_p3), %s440_s14, 1  ;;  %v218_v7 = vlaneseq (!%p161_p3)  ;;  %v454_v19 = vmov (!%p161_p3), 1966171168  }
   0x9   : > { %v212_v1 = vld [vmem:[#allocation2] sm:$0x1] (!%p161_p3)  ;;  %224 = vperm.xlu0 (!%p161_p3), %420, %v211_v2   ;;  %v277_v20 = vunpack.c.l.s4 (!%p161_p3), %v454_v19 }
   0xa   : > { %215 = vperm.xlu1 (!%p161_p3), %422, %v212_v1   ;;  %v219_v8 = vshrl.u32 (!%p161_p3), %v218_v7, 7  ;;  %vm293_vm0 = vcmp.lt.s32.totalorder (!%p161_p3), %v218_v7, 256 }
   0xb   : > { %v278_v27 = vunpack.c.0.s8 (!%p161_p3), %v277_v20 }
   0xc   : > { %v220_v9 = vsub.s32 (!%p161_p3), 0, %v219_v8 }
   0xd   : > { %421 = vset.pattern.permute.xlu0 (!%p161_p3), %v452_v5  ;;  %v281_v33 = vsub.s32 (!%p161_p3), %v278_v27, %v219_v8 }
   0xe   : > { %423 = vset.pattern.permute.xlu1 (!%p161_p3), %v451_v4  ;;  %234 = vperm.xlu0 (!%p161_p3), %421, %v211_v2  }
   0xf   : > { %248 = vperm.xlu1 %423, %v211_v2   ;;  %s527_s14 = smov (!%p192_p4, %s440_s14), 1 }
  0x10   : > { %s390_s19 = sshll.u32 %s527_s14, 3  ;;  %s384_s23 = sshll.u32 %s527_s14, 1 }
  0x11   : > { %s199_s22 = scalar_lea.vmem %s518_s0, %s390_s19  ;;  %s208_s26 = scalar_lea.vmem %s521_s3, %s384_s23 }
  0x12   : > { %425 = vset.pattern.permute.xlu0 %v453_v6  ;;  %v210_v13 = vld [vmem:[%s199_s22] sm:$0xff] }
  0x13   : > { %424 = vset.pattern.permute.xlu1 %v453_v6 }
  0x14   : > { %262 = vperm.xlu1 %424, %v211_v2  }
  0x88   : > { %v225_v11 = vpop.permute.xlu0 %224 }
  0x89   : > { %v216_v10 = vpop.permute.xlu1 %215  ;;  %v230_v12 = vrot.slane %v225_v11, %v220_v9 }
  0x8a   : > { %v221_v21 = vrot.slane %v216_v10, %v220_v9 }
  0x8b   : > { %v231_v16 = vmul.f32 %v230_v12, %v210_v13 }
  0x8d   : > { %v235_v15 = vpop.permute.xlu0 %234  ;;  %v232_v24 = vadd.f32 %v231_v16, %v221_v21 }
  0x8e   : > { %v249_v14 = vpop.permute.xlu1 %248  ;;  %v240_v18 = vrot.slane %v235_v15, %v220_v9 }
  0x8f   : > { %v254_v17 = vrot.slane %v249_v14, %v220_v9 }
  0x90   : > { %v241_v23 = vmul.f32 %v240_v18, %v210_v13 }
  0x91   : > { %v255_v22 = vmul.f32 %v254_v17, %v210_v13 }
  0x92   : > { %v385_v25 = vrot.slane %v241_v23, 9 }
  0x93   : > { %v263_v26 = vpop.permute.xlu1 %262  ;;  %v386_v29 = vrot.slane %v255_v22, 10 }
  0x94   : > { %v268_v28 = vrot.slane %v263_v26, %v220_v9  ;;  %v246_v30 = vadd.f32 %v385_v25, %v232_v24 }
  0x96   : > { %v269_v31 = vmul.f32 %v268_v28, %v210_v13  ;;  %v260_v32 = vadd.f32 %v386_v29, %v246_v30 }
  0x98   : > { %v387_v34 = vrot.slane %v269_v31, 11 }
  0x9a   : > { %v274_v35 = vadd.f32 %v387_v34, %v260_v32 }
  0x9c   : > { %v282_v36 = vrot.slane %v274_v35, %v281_v33 }
  0x9e   : > { %v289_v37 = vrot.slane %v282_v36, %v281_v33 }
  0xa0   : > { %295 = vst.msk [vmem:[%s208_s26] sm:$0x3] %vm293_vm0, %v289_v37 }
  0xa1 PF: > { %s15_s16 = sadd.s32 1, %s448_s16   ;;  %s522_s14 = smov %s444_s15 }
  0xa2   : > { %p12_p5 = scmp.ge.s32.totalorder %s15_s16, 4   ;;  %s523_s15 = smov %s525_s2 }
  0xa4   :  { %14 = sbr.rel (!%p12_p5) target bundleno = 3 (0x3), region = 62 }

</bundles_post_ra>
